<compile_context>
chip_gen: v5e
topology: v5e:2x2
jax: 0.10.0
libtpu: 0.0.40
codegen_flags: <defaults>
</compile_context>

<pallas_src>
import functools
import math

import jax
import jax.numpy as jnp
from jax.experimental import pallas as pl
from jax.experimental.pallas import tpu as pltpu


# --------------------------- Fused MHA kernel ------------------------------ #

def _mha_fused_kernel(q_ref, k_ref, v_ref,
                      wq_ref, wk_ref, wv_ref, wo_ref,
                      bq_ref, bk_ref, bv_ref, bo_ref,
                      o_ref, *rest,
                      heads, compute_dtype, need_weights):
    """One batch-block (TB batch elements) per grid step; everything in VMEM.

    Blocks:
      q (TB, L, E), k/v (TB, S, E)             -- lane-dense (E last)
      wq/wk/wv/wo (E, E) in (In, Out) layout   -- no in-kernel transpose;
                                                  scale pre-folded into wq/bq
      bq/bk/bv/bo (1, E)
    Outputs:
      o (TB, L, E)   attention output
      w (TB, L, S)   head-averaged attention weights (fp32, only if
                     need_weights)
    Scratch:
      ctx (TB, L, E) per-head context assembly buffer (compute dtype)
    """
    if need_weights:
        w_ref, ctx_ref = rest
    else:
        (ctx_ref,) = rest

    cd = compute_dtype
    TB, L, E = q_ref.shape
    S = k_ref.shape[1]
    Dh = E // heads

    # ---- fused in-projections over the whole block (M = TB*L / TB*S) ----
    q_in = q_ref[...].reshape(TB * L, E).astype(cd)
    k_in = k_ref[...].reshape(TB * S, E).astype(cd)
    v_in = v_ref[...].reshape(TB * S, E).astype(cd)

    qp = (jnp.dot(q_in, wq_ref[...].astype(cd),
                  preferred_element_type=jnp.float32)
          + bq_ref[...].astype(jnp.float32)).reshape(TB, L, E)
    kp = (jnp.dot(k_in, wk_ref[...].astype(cd),
                  preferred_element_type=jnp.float32)
          + bk_ref[...].astype(jnp.float32)).reshape(TB, S, E)
    vp = (jnp.dot(v_in, wv_ref[...].astype(cd),
                  preferred_element_type=jnp.float32)
          + bv_ref[...].astype(jnp.float32)).reshape(TB, S, E)

    if need_weights:
        w_acc = jnp.zeros((TB, L, S), jnp.float32)

    # Per-head attention, batched over the TB batch elements with a
    # single-batch-dim dot_general per head; `heads` is a compile-time
    # constant so the loop is a static unroll.  Each head's context goes into
    # its lane slice of the VMEM scratch buffer (keeps vreg pressure flat and
    # lets out_proj be a single full-width matmul after the loop).
    for h in range(heads):
        sl = slice(h * Dh, (h + 1) * Dh)
        qh = qp[:, :, sl].astype(cd)      # (TB, L, Dh); scale already folded
        kh = kp[:, :, sl].astype(cd)      # (TB, S, Dh)
        vh = vp[:, :, sl].astype(cd)      # (TB, S, Dh)

        s = jnp.einsum('bld,bsd->bls', qh, kh,
                       preferred_element_type=jnp.float32)        # (TB, L, S)

        # softmax in fp32 vregs.
        m = jnp.max(s, axis=-1, keepdims=True)
        p = jnp.exp(s - m)
        denom = jnp.sum(p, axis=-1, keepdims=True)
        if need_weights:
            w = p * (1.0 / denom)          # exact: weights are user-visible
            w_acc = w_acc + w
        else:
            w = p * pl.reciprocal(denom, approx=True)   # EUP slot, ~free

        ctx_h = jnp.einsum('bls,bsd->bld', w.astype(cd), vh,
                           preferred_element_type=jnp.float32)    # (TB, L, Dh)
        ctx_ref[:, :, sl] = ctx_h.astype(ctx_ref.dtype)

    # ---- single out_proj over the whole block (contraction width = E) ----
    ctx = ctx_ref[...].reshape(TB * L, E)
    out = (jnp.dot(ctx, wo_ref[...].astype(cd),
                   preferred_element_type=jnp.float32)
           + bo_ref[...].astype(jnp.float32))
    o_ref[...] = out.reshape(TB, L, E).astype(o_ref.dtype)
    if need_weights:
        w_ref[...] = (w_acc * (1.0 / heads)).astype(w_ref.dtype)


def pallas_mha_fused(query, key, value, params, heads,
                     need_weights=True, block_batch=None):
    """query: (N, L, E), key/value: (N, S, E) ->
       (attn_out (N, L, E), attn_weights (N, L, S) or None)."""
    N, L, E = query.shape
    S = key.shape[1]
    assert E % heads == 0
    compute_dtype = params["wq"].dtype   # bf16 params => bf16 MXU operands

    # Batch blocking: TB batch elements per grid step so M = TB*L feeds the
    # MXU with >=256 rows where possible and the per-step overhead/weight DMA
    # is amortized.  TB is chosen as a divisor of N (no padded batch rows).
    if block_batch is None:
        tb = max(1, min(N, 256 // max(L, 1)))
    else:
        tb = max(1, min(N, block_batch))
    while N % tb:
        tb -= 1
    grid = (N // tb,)

    # Explicit VMEM budget (feedback: double-buffered ExE weights can exhaust
    # the default scoped limits on v5e/v7x at realistic E).
    in_b = jnp.dtype(query.dtype).itemsize
    w_b = jnp.dtype(compute_dtype).itemsize
    est = (2 * (tb * L * E + 2 * tb * S * E) * in_b          # q/k/v blocks (x2)
           + 2 * (4 * E * E + 4 * E) * w_b                   # weights/biases (x2)
           + 2 * (tb * L * E * in_b
                  + (tb * L * S * 4 if need_weights else 0))  # outputs (x2)
           + tb * L * E * w_b                                # ctx scratch
           + 4 * tb * (L + 2 * S) * E * 4                    # fp32 qp/kp/vp
           + 4 * tb * L * S * 4)                             # scores/weights
    vmem_limit = int(max(32 * 1024 * 1024, min(2 * est, 64 * 1024 * 1024)))

    kernel = functools.partial(_mha_fused_kernel, heads=heads,
                               compute_dtype=compute_dtype,
                               need_weights=need_weights)

    full2 = lambda b: (0, 0)
    blk3 = lambda b: (b, 0, 0)
    if need_weights:
        out_shape = (jax.ShapeDtypeStruct((N, L, E), query.dtype),
                     jax.ShapeDtypeStruct((N, L, S), jnp.float32))
        out_specs = (pl.BlockSpec((tb, L, E), blk3),
                     pl.BlockSpec((tb, L, S), blk3))
    else:
        out_shape = (jax.ShapeDtypeStruct((N, L, E), query.dtype),)
        out_specs = (pl.BlockSpec((tb, L, E), blk3),)

    outs = pl.pallas_call(
        kernel,
        out_shape=out_shape,
        grid=grid,
        in_specs=[
            pl.BlockSpec((tb, L, E), blk3),
            pl.BlockSpec((tb, S, E), blk3),
            pl.BlockSpec((tb, S, E), blk3),
            pl.BlockSpec((E, E), full2),
            pl.BlockSpec((E, E), full2),
            pl.BlockSpec((E, E), full2),
            pl.BlockSpec((E, E), full2),
            pl.BlockSpec((1, E), full2),
            pl.BlockSpec((1, E), full2),
            pl.BlockSpec((1, E), full2),
            pl.BlockSpec((1, E), full2),
        ],
        out_specs=out_specs,
        scratch_shapes=[pltpu.VMEM((tb, L, E), compute_dtype)],
        compiler_params=pltpu.CompilerParams(
            dimension_semantics=("parallel",),   # batch-block axis over TCs
            vmem_limit_bytes=vmem_limit,
        ),
    )(query, key, value,
      params["wq"], params["wk"], params["wv"], params["wo"],
      params["bq"], params["bk"], params["bv"], params["bo"])

    if need_weights:
        return outs[0], outs[1]
    return outs[0], None


# ------------------------------- Module glue -------------------------------- #

def init_params(key, embed_size, heads, dtype=jnp.float32):
    """nn.MultiheadAttention-shaped params, stored kernel-ready:
    pre-transposed to (In, Out), biases as (1, E), and the attention scale
    1/sqrt(Dh) folded into wq / bq (so the kernel does no per-head scaling)."""
    E = embed_size
    Dh = E // heads
    scale = 1.0 / math.sqrt(Dh)
    k1, k2, k3, k4 = jax.random.split(key, 4)
    bound = 1.0 / math.sqrt(E)
    in_w = jax.random.uniform(k1, (3 * E, E), jnp.float32, -bound, bound)   # torch (Out, In)
    in_b = jax.random.uniform(k2, (3 * E,), jnp.float32, -bound, bound)
    out_w = jax.random.uniform(k3, (E, E), jnp.float32, -bound, bound)      # torch (Out, In)
    out_b = jax.random.uniform(k4, (E,), jnp.float32, -bound, bound)
    wq, wk, wv = in_w[:E], in_w[E:2 * E], in_w[2 * E:]
    bq, bk, bv = in_b[:E], in_b[E:2 * E], in_b[2 * E:]
    return dict(
        wq=(wq.T * scale).astype(dtype),          # scale folded in
        wk=wk.T.astype(dtype),
        wv=wv.T.astype(dtype),
        wo=out_w.T.astype(dtype),
        bq=(bq * scale).reshape(1, E).astype(dtype),   # scale folded in
        bk=bk.reshape(1, E).astype(dtype),
        bv=bv.reshape(1, E).astype(dtype),
        bo=out_b.reshape(1, E).astype(dtype),
    )


def multi_head_attention(params, query, key, value, heads, need_weights=True):
    """query: (N, L, E), key/value: (N, S, E) -> ((N, L, E), (N, L, S)|None)."""
    attn_out, attn_w = pallas_mha_fused(query, key, value, params, heads,
                                        need_weights=need_weights)
    # TODO(synk): nn.Dropout(p=0.1) is identity here (eval-mode semantics).
    return attn_out, attn_w


def mha_reference(params, query, key, value, heads):
    """Pure-JAX fp32 reference of nn.MultiheadAttention forward (eval).
    Note: params already contain the 1/sqrt(Dh) scale folded into wq/bq."""
    N, L, E = query.shape
    S = key.shape[1]
    Dh = E // heads
    f32 = jnp.float32
    q = query.astype(f32) @ params["wq"].astype(f32) + params["bq"].astype(f32)
    k = key.astype(f32) @ params["wk"].astype(f32) + params["bk"].astype(f32)
    v = value.astype(f32) @ params["wv"].astype(f32) + params["bv"].astype(f32)
    q = q.reshape(N, L, heads, Dh).transpose(0, 2, 1, 3)
    k = k.reshape(N, S, heads, Dh).transpose(0, 2, 1, 3)
    v = v.reshape(N, S, heads, Dh).transpose(0, 2, 1, 3)
    s = jnp.einsum("nhld,nhsd->nhls", q, k)        # scale already in wq/bq
    w = jax.nn.softmax(s, axis=-1)
    ctx = jnp.einsum("nhls,nhsd->nhld", w, v)
    ctx = ctx.transpose(0, 2, 1, 3).reshape(N, L, E)
    out = ctx @ params["wo"].astype(f32) + params["bo"].astype(f32)
    return out, jnp.mean(w, axis=1)


if __name__ == "__main__":
    embed_size = 32
    heads = 4
    batch = 2
    L = 8    # query (text) sequence length
    S = 16   # key/value (image) sequence length

    root = jax.random.PRNGKey(0)
    k_par, k_q, k_k, k_v = jax.random.split(root, 4)

    query = jax.random.normal(k_q, (batch, L, embed_size), jnp.float32)
    key = jax.random.normal(k_k, (batch, S, embed_size), jnp.float32)
    value = jax.random.normal(k_v, (batch, S, embed_size), jnp.float32)

    # fp32 params: check against the pure-JAX reference.
    params_f32 = init_params(k_par, embed_size, heads, dtype=jnp.float32)
    attn_output, attn_weights = multi_head_attention(
        params_f32, query, key, value, heads)
    jax.block_until_ready((attn_output, attn_weights))
    ref_out, ref_w = mha_reference(params_f32, query, key, value, heads)

    assert attn_output.shape == (batch, L, embed_size)
    assert attn_weights.shape == (batch, L, S)
    # exact softmax normalization -> rows of averaged weights sum to ~1.
    assert bool(jnp.allclose(jnp.sum(attn_weights, axis=-1), 1.0, atol=2e-3))
    assert bool(jnp.allclose(attn_output, ref_out, rtol=2e-2, atol=2e-2))
    assert bool(jnp.allclose(attn_weights, ref_w, rtol=2e-2, atol=2e-2))

    # need_weights=False fast path: no (N, L, S) fp32 HBM writeback.
    out_only, no_w = multi_head_attention(
        params_f32, query, key, value, heads, need_weights=False)
    jax.block_until_ready(out_only)
    assert no_w is None
    assert bool(jnp.allclose(out_only, ref_out, rtol=2e-2, atol=2e-2))

    # bf16 MXU operands (fp32 accumulation) — the v6e/v7x-recommended path.
    params_bf16 = jax.tree_util.tree_map(
        lambda p: p.astype(jnp.bfloat16), params_f32)
    out16, w16 = multi_head_attention(params_bf16, query, key, value, heads)
    jax.block_until_ready((out16, w16))
    assert bool(jnp.allclose(out16, ref_out, rtol=6e-2, atol=6e-2))

    print("KERNEL_OK")
</pallas_src>

<mosaic_0001>
module attributes {stable_mosaic.version = 11 : i64} {
  func.func @_mha_fused_kernel(%arg0: i32, %arg1: memref<2x8x32xf32, #tpu.memory_space<vmem>>, %arg2: memref<2x16x32xf32, #tpu.memory_space<vmem>>, %arg3: memref<2x16x32xf32, #tpu.memory_space<vmem>>, %arg4: memref<32x32xf32, #tpu.memory_space<vmem>>, %arg5: memref<32x32xf32, #tpu.memory_space<vmem>>, %arg6: memref<32x32xf32, #tpu.memory_space<vmem>>, %arg7: memref<32x32xf32, #tpu.memory_space<vmem>>, %arg8: memref<1x32xf32, #tpu.memory_space<vmem>>, %arg9: memref<1x32xf32, #tpu.memory_space<vmem>>, %arg10: memref<1x32xf32, #tpu.memory_space<vmem>>, %arg11: memref<1x32xf32, #tpu.memory_space<vmem>>, %arg12: memref<2x8x32xf32, #tpu.memory_space<vmem>>, %arg13: memref<2x8x16xf32, #tpu.memory_space<vmem>>, %arg14: memref<2x8x32xf32, #tpu.memory_space<vmem>>) attributes {dimension_semantics = [#tpu.dimension_semantics<parallel>], iteration_bounds = array<i64: 1>, scalar_prefetch = 0 : i64, scratch_operands = 1 : i64, tpu.core_type = #tpu.core_type<tc>, window_params = [{transform_indices = @transform_0, window_bounds = array<i64: 2, 8, 32>}, {transform_indices = @transform_1, window_bounds = array<i64: 2, 16, 32>}, {transform_indices = @transform_2, window_bounds = array<i64: 2, 16, 32>}, {pipeline_mode = #tpu.pipeline_mode<synchronous>, transform_indices = @transform_3, window_bounds = array<i64: 32, 32>}, {pipeline_mode = #tpu.pipeline_mode<synchronous>, transform_indices = @transform_4, window_bounds = array<i64: 32, 32>}, {pipeline_mode = #tpu.pipeline_mode<synchronous>, transform_indices = @transform_5, window_bounds = array<i64: 32, 32>}, {pipeline_mode = #tpu.pipeline_mode<synchronous>, transform_indices = @transform_6, window_bounds = array<i64: 32, 32>}, {pipeline_mode = #tpu.pipeline_mode<synchronous>, transform_indices = @transform_7, window_bounds = array<i64: 1, 32>}, {pipeline_mode = #tpu.pipeline_mode<synchronous>, transform_indices = @transform_8, window_bounds = array<i64: 1, 32>}, {pipeline_mode = #tpu.pipeline_mode<synchronous>, transform_indices = @transform_9, window_bounds = array<i64: 1, 32>}, {pipeline_mode = #tpu.pipeline_mode<synchronous>, transform_indices = @transform_10, window_bounds = array<i64: 1, 32>}, {transform_indices = @transform_11, window_bounds = array<i64: 2, 8, 32>}, {transform_indices = @transform_12, window_bounds = array<i64: 2, 8, 16>}]} {
    %c0 = arith.constant 0 : index
    %c0_0 = arith.constant 0 : index
    %c0_1 = arith.constant 0 : index
    %0 = vector.load %arg1[%c0, %c0_0, %c0_1] : memref<2x8x32xf32, #tpu.memory_space<vmem>>, vector<2x8x32xf32>
    %1 = vector.shape_cast %0 : vector<2x8x32xf32> to vector<16x32xf32>
    %c0_2 = arith.constant 0 : index
    %c0_3 = arith.constant 0 : index
    %c0_4 = arith.constant 0 : index
    %2 = vector.load %arg2[%c0_2, %c0_3, %c0_4] : memref<2x16x32xf32, #tpu.memory_space<vmem>>, vector<2x16x32xf32>
    %3 = vector.shape_cast %2 : vector<2x16x32xf32> to vector<32x32xf32>
    %c0_5 = arith.constant 0 : index
    %c0_6 = arith.constant 0 : index
    %c0_7 = arith.constant 0 : index
    %4 = vector.load %arg3[%c0_5, %c0_6, %c0_7] : memref<2x16x32xf32, #tpu.memory_space<vmem>>, vector<2x16x32xf32>
    %5 = vector.shape_cast %4 : vector<2x16x32xf32> to vector<32x32xf32>
    %c0_8 = arith.constant 0 : index
    %c0_9 = arith.constant 0 : index
    %6 = vector.load %arg4[%c0_8, %c0_9] : memref<32x32xf32, #tpu.memory_space<vmem>>, vector<32x32xf32>
    %cst = arith.constant dense<0.000000e+00> : vector<16x32xf32>
    %7 = tpu.matmul %1, %6, %cst {dimension_numbers = #tpu.dot_dimension_numbers<[1], [0], [0], [1], [0, 0, 1, 1], [], []>} : vector<16x32xf32>, vector<32x32xf32>, vector<16x32xf32> -> vector<16x32xf32>
    %c0_10 = arith.constant 0 : index
    %c0_11 = arith.constant 0 : index
    %8 = vector.load %arg8[%c0_10, %c0_11] : memref<1x32xf32, #tpu.memory_space<vmem>>, vector<1x32xf32>
    %9 = vector.broadcast %8 : vector<1x32xf32> to vector<16x32xf32>
    %10 = arith.addf %7, %9 : vector<16x32xf32>
    %11 = vector.shape_cast %10 : vector<16x32xf32> to vector<2x8x32xf32>
    %c0_12 = arith.constant 0 : index
    %c0_13 = arith.constant 0 : index
    %12 = vector.load %arg5[%c0_12, %c0_13] : memref<32x32xf32, #tpu.memory_space<vmem>>, vector<32x32xf32>
    %cst_14 = arith.constant dense<0.000000e+00> : vector<32x32xf32>
    %13 = tpu.matmul %3, %12, %cst_14 {dimension_numbers = #tpu.dot_dimension_numbers<[1], [0], [0], [1], [0, 0, 1, 1], [], []>} : vector<32x32xf32>, vector<32x32xf32>, vector<32x32xf32> -> vector<32x32xf32>
    %c0_15 = arith.constant 0 : index
    %c0_16 = arith.constant 0 : index
    %14 = vector.load %arg9[%c0_15, %c0_16] : memref<1x32xf32, #tpu.memory_space<vmem>>, vector<1x32xf32>
    %15 = vector.broadcast %14 : vector<1x32xf32> to vector<32x32xf32>
    %16 = arith.addf %13, %15 : vector<32x32xf32>
    %17 = vector.shape_cast %16 : vector<32x32xf32> to vector<2x16x32xf32>
    %c0_17 = arith.constant 0 : index
    %c0_18 = arith.constant 0 : index
    %18 = vector.load %arg6[%c0_17, %c0_18] : memref<32x32xf32, #tpu.memory_space<vmem>>, vector<32x32xf32>
    %cst_19 = arith.constant dense<0.000000e+00> : vector<32x32xf32>
    %19 = tpu.matmul %5, %18, %cst_19 {dimension_numbers = #tpu.dot_dimension_numbers<[1], [0], [0], [1], [0, 0, 1, 1], [], []>} : vector<32x32xf32>, vector<32x32xf32>, vector<32x32xf32> -> vector<32x32xf32>
    %c0_20 = arith.constant 0 : index
    %c0_21 = arith.constant 0 : index
    %20 = vector.load %arg10[%c0_20, %c0_21] : memref<1x32xf32, #tpu.memory_space<vmem>>, vector<1x32xf32>
    %21 = vector.broadcast %20 : vector<1x32xf32> to vector<32x32xf32>
    %22 = arith.addf %19, %21 : vector<32x32xf32>
    %23 = vector.shape_cast %22 : vector<32x32xf32> to vector<2x16x32xf32>
    %cst_22 = arith.constant 0.000000e+00 : f32
    %24 = vector.broadcast %cst_22 : f32 to vector<2x8x16xf32>
    %25 = vector.extract_strided_slice %11 {offsets = [0, 0, 0], sizes = [2, 8, 8], strides = [1, 1, 1]} : vector<2x8x32xf32> to vector<2x8x8xf32>
    %26 = vector.extract_strided_slice %17 {offsets = [0, 0, 0], sizes = [2, 16, 8], strides = [1, 1, 1]} : vector<2x16x32xf32> to vector<2x16x8xf32>
    %27 = vector.extract_strided_slice %23 {offsets = [0, 0, 0], sizes = [2, 16, 8], strides = [1, 1, 1]} : vector<2x16x32xf32> to vector<2x16x8xf32>
    "tpu.trace_start"() <{level = 10 : i32, message = "bld,bsd->bls"}> : () -> ()
    %cst_23 = arith.constant dense<0.000000e+00> : vector<2x8x16xf32>
    %28 = tpu.matmul %25, %26, %cst_23 {dimension_numbers = #tpu.dot_dimension_numbers<[2], [2], [1], [1], [0, 0, 0, 1, 1, 1], [0], [0]>} : vector<2x8x8xf32>, vector<2x16x8xf32>, vector<2x8x16xf32> -> vector<2x8x16xf32>
    "tpu.trace_stop"() : () -> ()
    %cst_24 = arith.constant dense<0xFF800000> : vector<2x8xf32>
    %29 = vector.multi_reduction <maximumf>, %28, %cst_24 [2] : vector<2x8x16xf32> to vector<2x8xf32>
    %30 = vector.shape_cast %29 : vector<2x8xf32> to vector<2x8x1xf32>
    %31 = vector.broadcast %30 : vector<2x8x1xf32> to vector<2x8x16xf32>
    %32 = arith.subf %28, %31 : vector<2x8x16xf32>
    %33 = math.exp %32 : vector<2x8x16xf32>
    %cst_25 = arith.constant dense<0.000000e+00> : vector<2x8xf32>
    %34 = vector.multi_reduction <add>, %33, %cst_25 [2] : vector<2x8x16xf32> to vector<2x8xf32>
    %35 = vector.shape_cast %34 : vector<2x8xf32> to vector<2x8x1xf32>
    %cst_26 = arith.constant 1.000000e+00 : f32
    %36 = vector.broadcast %cst_26 : f32 to vector<2x8x1xf32>
    %37 = arith.divf %36, %35 : vector<2x8x1xf32>
    %38 = vector.broadcast %37 : vector<2x8x1xf32> to vector<2x8x16xf32>
    %39 = arith.mulf %33, %38 : vector<2x8x16xf32>
    %40 = arith.addf %24, %39 : vector<2x8x16xf32>
    "tpu.trace_start"() <{level = 10 : i32, message = "bls,bsd->bld"}> : () -> ()
    %cst_27 = arith.constant dense<0.000000e+00> : vector<2x8x8xf32>
    %41 = tpu.matmul %39, %27, %cst_27 {dimension_numbers = #tpu.dot_dimension_numbers<[2], [1], [1], [2], [0, 0, 0, 1, 1, 2], [0], [0]>} : vector<2x8x16xf32>, vector<2x16x8xf32>, vector<2x8x8xf32> -> vector<2x8x8xf32>
    "tpu.trace_stop"() : () -> ()
    %c0_28 = arith.constant 0 : index
    %c0_29 = arith.constant 0 : index
    %c0_30 = arith.constant 0 : index
    %42 = vector.load %arg14[%c0_28, %c0_29, %c0_30] : memref<2x8x32xf32, #tpu.memory_space<vmem>>, vector<2x8x8xf32>
    tpu.vector_store %arg14[%c0_28, %c0_29, %c0_30], %41 {strides = array<i32>} : memref<2x8x32xf32, #tpu.memory_space<vmem>>, vector<2x8x8xf32>,
    %43 = vector.extract_strided_slice %11 {offsets = [0, 0, 8], sizes = [2, 8, 8], strides = [1, 1, 1]} : vector<2x8x32xf32> to vector<2x8x8xf32>
    %44 = vector.extract_strided_slice %17 {offsets = [0, 0, 8], sizes = [2, 16, 8], strides = [1, 1, 1]} : vector<2x16x32xf32> to vector<2x16x8xf32>
    %45 = vector.extract_strided_slice %23 {offsets = [0, 0, 8], sizes = [2, 16, 8], strides = [1, 1, 1]} : vector<2x16x32xf32> to vector<2x16x8xf32>
    "tpu.trace_start"() <{level = 10 : i32, message = "bld,bsd->bls"}> : () -> ()
    %cst_31 = arith.constant dense<0.000000e+00> : vector<2x8x16xf32>
    %46 = tpu.matmul %43, %44, %cst_31 {dimension_numbers = #tpu.dot_dimension_numbers<[2], [2], [1], [1], [0, 0, 0, 1, 1, 1], [0], [0]>} : vector<2x8x8xf32>, vector<2x16x8xf32>, vector<2x8x16xf32> -> vector<2x8x16xf32>
    "tpu.trace_stop"() : () -> ()
    %cst_32 = arith.constant dense<0xFF800000> : vector<2x8xf32>
    %47 = vector.multi_reduction <maximumf>, %46, %cst_32 [2] : vector<2x8x16xf32> to vector<2x8xf32>
    %48 = vector.shape_cast %47 : vector<2x8xf32> to vector<2x8x1xf32>
    %49 = vector.broadcast %48 : vector<2x8x1xf32> to vector<2x8x16xf32>
    %50 = arith.subf %46, %49 : vector<2x8x16xf32>
    %51 = math.exp %50 : vector<2x8x16xf32>
    %cst_33 = arith.constant dense<0.000000e+00> : vector<2x8xf32>
    %52 = vector.multi_reduction <add>, %51, %cst_33 [2] : vector<2x8x16xf32> to vector<2x8xf32>
    %53 = vector.shape_cast %52 : vector<2x8xf32> to vector<2x8x1xf32>
    %cst_34 = arith.constant 1.000000e+00 : f32
    %54 = vector.broadcast %cst_34 : f32 to vector<2x8x1xf32>
    %55 = arith.divf %54, %53 : vector<2x8x1xf32>
    %56 = vector.broadcast %55 : vector<2x8x1xf32> to vector<2x8x16xf32>
    %57 = arith.mulf %51, %56 : vector<2x8x16xf32>
    %58 = arith.addf %40, %57 : vector<2x8x16xf32>
    "tpu.trace_start"() <{level = 10 : i32, message = "bls,bsd->bld"}> : () -> ()
    %cst_35 = arith.constant dense<0.000000e+00> : vector<2x8x8xf32>
    %59 = tpu.matmul %57, %45, %cst_35 {dimension_numbers = #tpu.dot_dimension_numbers<[2], [1], [1], [2], [0, 0, 0, 1, 1, 2], [0], [0]>} : vector<2x8x16xf32>, vector<2x16x8xf32>, vector<2x8x8xf32> -> vector<2x8x8xf32>
    "tpu.trace_stop"() : () -> ()
    %c0_36 = arith.constant 0 : index
    %c0_37 = arith.constant 0 : index
    %c8 = arith.constant 8 : index
    %60 = vector.load %arg14[%c0_36, %c0_37, %c8] : memref<2x8x32xf32, #tpu.memory_space<vmem>>, vector<2x8x8xf32>
    tpu.vector_store %arg14[%c0_36, %c0_37, %c8], %59 {strides = array<i32>} : memref<2x8x32xf32, #tpu.memory_space<vmem>>, vector<2x8x8xf32>,
    %61 = vector.extract_strided_slice %11 {offsets = [0, 0, 16], sizes = [2, 8, 8], strides = [1, 1, 1]} : vector<2x8x32xf32> to vector<2x8x8xf32>
    %62 = vector.extract_strided_slice %17 {offsets = [0, 0, 16], sizes = [2, 16, 8], strides = [1, 1, 1]} : vector<2x16x32xf32> to vector<2x16x8xf32>
    %63 = vector.extract_strided_slice %23 {offsets = [0, 0, 16], sizes = [2, 16, 8], strides = [1, 1, 1]} : vector<2x16x32xf32> to vector<2x16x8xf32>
    "tpu.trace_start"() <{level = 10 : i32, message = "bld,bsd->bls"}> : () -> ()
    %cst_38 = arith.constant dense<0.000000e+00> : vector<2x8x16xf32>
    %64 = tpu.matmul %61, %62, %cst_38 {dimension_numbers = #tpu.dot_dimension_numbers<[2], [2], [1], [1], [0, 0, 0, 1, 1, 1], [0], [0]>} : vector<2x8x8xf32>, vector<2x16x8xf32>, vector<2x8x16xf32> -> vector<2x8x16xf32>
    "tpu.trace_stop"() : () -> ()
    %cst_39 = arith.constant dense<0xFF800000> : vector<2x8xf32>
    %65 = vector.multi_reduction <maximumf>, %64, %cst_39 [2] : vector<2x8x16xf32> to vector<2x8xf32>
    %66 = vector.shape_cast %65 : vector<2x8xf32> to vector<2x8x1xf32>
    %67 = vector.broadcast %66 : vector<2x8x1xf32> to vector<2x8x16xf32>
    %68 = arith.subf %64, %67 : vector<2x8x16xf32>
    %69 = math.exp %68 : vector<2x8x16xf32>
    %cst_40 = arith.constant dense<0.000000e+00> : vector<2x8xf32>
    %70 = vector.multi_reduction <add>, %69, %cst_40 [2] : vector<2x8x16xf32> to vector<2x8xf32>
    %71 = vector.shape_cast %70 : vector<2x8xf32> to vector<2x8x1xf32>
    %cst_41 = arith.constant 1.000000e+00 : f32
    %72 = vector.broadcast %cst_41 : f32 to vector<2x8x1xf32>
    %73 = arith.divf %72, %71 : vector<2x8x1xf32>
    %74 = vector.broadcast %73 : vector<2x8x1xf32> to vector<2x8x16xf32>
    %75 = arith.mulf %69, %74 : vector<2x8x16xf32>
    %76 = arith.addf %58, %75 : vector<2x8x16xf32>
    "tpu.trace_start"() <{level = 10 : i32, message = "bls,bsd->bld"}> : () -> ()
    %cst_42 = arith.constant dense<0.000000e+00> : vector<2x8x8xf32>
    %77 = tpu.matmul %75, %63, %cst_42 {dimension_numbers = #tpu.dot_dimension_numbers<[2], [1], [1], [2], [0, 0, 0, 1, 1, 2], [0], [0]>} : vector<2x8x16xf32>, vector<2x16x8xf32>, vector<2x8x8xf32> -> vector<2x8x8xf32>
    "tpu.trace_stop"() : () -> ()
    %c0_43 = arith.constant 0 : index
    %c0_44 = arith.constant 0 : index
    %c16 = arith.constant 16 : index
    %78 = vector.load %arg14[%c0_43, %c0_44, %c16] : memref<2x8x32xf32, #tpu.memory_space<vmem>>, vector<2x8x8xf32>
    tpu.vector_store %arg14[%c0_43, %c0_44, %c16], %77 {strides = array<i32>} : memref<2x8x32xf32, #tpu.memory_space<vmem>>, vector<2x8x8xf32>,
    %79 = vector.extract_strided_slice %11 {offsets = [0, 0, 24], sizes = [2, 8, 8], strides = [1, 1, 1]} : vector<2x8x32xf32> to vector<2x8x8xf32>
    %80 = vector.extract_strided_slice %17 {offsets = [0, 0, 24], sizes = [2, 16, 8], strides = [1, 1, 1]} : vector<2x16x32xf32> to vector<2x16x8xf32>
    %81 = vector.extract_strided_slice %23 {offsets = [0, 0, 24], sizes = [2, 16, 8], strides = [1, 1, 1]} : vector<2x16x32xf32> to vector<2x16x8xf32>
    "tpu.trace_start"() <{level = 10 : i32, message = "bld,bsd->bls"}> : () -> ()
    %cst_45 = arith.constant dense<0.000000e+00> : vector<2x8x16xf32>
    %82 = tpu.matmul %79, %80, %cst_45 {dimension_numbers = #tpu.dot_dimension_numbers<[2], [2], [1], [1], [0, 0, 0, 1, 1, 1], [0], [0]>} : vector<2x8x8xf32>, vector<2x16x8xf32>, vector<2x8x16xf32> -> vector<2x8x16xf32>
    "tpu.trace_stop"() : () -> ()
    %cst_46 = arith.constant dense<0xFF800000> : vector<2x8xf32>
    %83 = vector.multi_reduction <maximumf>, %82, %cst_46 [2] : vector<2x8x16xf32> to vector<2x8xf32>
    %84 = vector.shape_cast %83 : vector<2x8xf32> to vector<2x8x1xf32>
    %85 = vector.broadcast %84 : vector<2x8x1xf32> to vector<2x8x16xf32>
    %86 = arith.subf %82, %85 : vector<2x8x16xf32>
    %87 = math.exp %86 : vector<2x8x16xf32>
    %cst_47 = arith.constant dense<0.000000e+00> : vector<2x8xf32>
    %88 = vector.multi_reduction <add>, %87, %cst_47 [2] : vector<2x8x16xf32> to vector<2x8xf32>
    %89 = vector.shape_cast %88 : vector<2x8xf32> to vector<2x8x1xf32>
    %cst_48 = arith.constant 1.000000e+00 : f32
    %90 = vector.broadcast %cst_48 : f32 to vector<2x8x1xf32>
    %91 = arith.divf %90, %89 : vector<2x8x1xf32>
    %92 = vector.broadcast %91 : vector<2x8x1xf32> to vector<2x8x16xf32>
    %93 = arith.mulf %87, %92 : vector<2x8x16xf32>
    %94 = arith.addf %76, %93 : vector<2x8x16xf32>
    "tpu.trace_start"() <{level = 10 : i32, message = "bls,bsd->bld"}> : () -> ()
    %cst_49 = arith.constant dense<0.000000e+00> : vector<2x8x8xf32>
    %95 = tpu.matmul %93, %81, %cst_49 {dimension_numbers = #tpu.dot_dimension_numbers<[2], [1], [1], [2], [0, 0, 0, 1, 1, 2], [0], [0]>} : vector<2x8x16xf32>, vector<2x16x8xf32>, vector<2x8x8xf32> -> vector<2x8x8xf32>
    "tpu.trace_stop"() : () -> ()
    %c0_50 = arith.constant 0 : index
    %c0_51 = arith.constant 0 : index
    %c24 = arith.constant 24 : index
    %96 = vector.load %arg14[%c0_50, %c0_51, %c24] : memref<2x8x32xf32, #tpu.memory_space<vmem>>, vector<2x8x8xf32>
    tpu.vector_store %arg14[%c0_50, %c0_51, %c24], %95 {strides = array<i32>} : memref<2x8x32xf32, #tpu.memory_space<vmem>>, vector<2x8x8xf32>,
    %c0_52 = arith.constant 0 : index
    %c0_53 = arith.constant 0 : index
    %c0_54 = arith.constant 0 : index
    %97 = vector.load %arg14[%c0_52, %c0_53, %c0_54] : memref<2x8x32xf32, #tpu.memory_space<vmem>>, vector<2x8x32xf32>
    %98 = vector.shape_cast %97 : vector<2x8x32xf32> to vector<16x32xf32>
    %c0_55 = arith.constant 0 : index
    %c0_56 = arith.constant 0 : index
    %99 = vector.load %arg7[%c0_55, %c0_56] : memref<32x32xf32, #tpu.memory_space<vmem>>, vector<32x32xf32>
    %cst_57 = arith.constant dense<0.000000e+00> : vector<16x32xf32>
    %100 = tpu.matmul %98, %99, %cst_57 {dimension_numbers = #tpu.dot_dimension_numbers<[1], [0], [0], [1], [0, 0, 1, 1], [], []>} : vector<16x32xf32>, vector<32x32xf32>, vector<16x32xf32> -> vector<16x32xf32>
    %c0_58 = arith.constant 0 : index
    %c0_59 = arith.constant 0 : index
    %101 = vector.load %arg11[%c0_58, %c0_59] : memref<1x32xf32, #tpu.memory_space<vmem>>, vector<1x32xf32>
    %102 = vector.broadcast %101 : vector<1x32xf32> to vector<16x32xf32>
    %103 = arith.addf %100, %102 : vector<16x32xf32>
    %104 = vector.shape_cast %103 : vector<16x32xf32> to vector<2x8x32xf32>
    %c0_60 = arith.constant 0 : index
    %c0_61 = arith.constant 0 : index
    %c0_62 = arith.constant 0 : index
    %105 = vector.load %arg12[%c0_60, %c0_61, %c0_62] : memref<2x8x32xf32, #tpu.memory_space<vmem>>, vector<2x8x32xf32>
    tpu.vector_store %arg12[%c0_60, %c0_61, %c0_62], %104 {strides = array<i32>} : memref<2x8x32xf32, #tpu.memory_space<vmem>>, vector<2x8x32xf32>,
    %cst_63 = arith.constant 2.500000e-01 : f32
    %106 = vector.broadcast %cst_63 : f32 to vector<2x8x16xf32>
    %107 = arith.mulf %94, %106 : vector<2x8x16xf32>
    %c0_64 = arith.constant 0 : index
    %c0_65 = arith.constant 0 : index
    %c0_66 = arith.constant 0 : index
    %108 = vector.load %arg13[%c0_64, %c0_65, %c0_66] : memref<2x8x16xf32, #tpu.memory_space<vmem>>, vector<2x8x16xf32>
    tpu.vector_store %arg13[%c0_64, %c0_65, %c0_66], %107 {strides = array<i32>} : memref<2x8x16xf32, #tpu.memory_space<vmem>>, vector<2x8x16xf32>,
    return
  }
  func.func @transform_0(%arg0: i32) -> (i32, i32, i32) {
    %c0_i32 = arith.constant 0 : i32
    %c0_i32_0 = arith.constant 0 : i32
    %c0_i32_1 = arith.constant 0 : i32
    return %arg0, %c0_i32, %c0_i32_0 : i32, i32, i32
  }
  func.func @transform_1(%arg0: i32) -> (i32, i32, i32) {
    %c0_i32 = arith.constant 0 : i32
    %c0_i32_0 = arith.constant 0 : i32
    %c0_i32_1 = arith.constant 0 : i32
    return %arg0, %c0_i32, %c0_i32_0 : i32, i32, i32
  }
  func.func @transform_2(%arg0: i32) -> (i32, i32, i32) {
    %c0_i32 = arith.constant 0 : i32
    %c0_i32_0 = arith.constant 0 : i32
    %c0_i32_1 = arith.constant 0 : i32
    return %arg0, %c0_i32, %c0_i32_0 : i32, i32, i32
  }
  func.func @transform_3(%arg0: i32) -> (i32, i32) {
    %c0_i32 = arith.constant 0 : i32
    %c0_i32_0 = arith.constant 0 : i32
    %c0_i32_1 = arith.constant 0 : i32
    return %c0_i32, %c0_i32_0 : i32, i32
  }
  func.func @transform_4(%arg0: i32) -> (i32, i32) {
    %c0_i32 = arith.constant 0 : i32
    %c0_i32_0 = arith.constant 0 : i32
    %c0_i32_1 = arith.constant 0 : i32
    return %c0_i32, %c0_i32_0 : i32, i32
  }
  func.func @transform_5(%arg0: i32) -> (i32, i32) {
    %c0_i32 = arith.constant 0 : i32
    %c0_i32_0 = arith.constant 0 : i32
    %c0_i32_1 = arith.constant 0 : i32
    return %c0_i32, %c0_i32_0 : i32, i32
  }
  func.func @transform_6(%arg0: i32) -> (i32, i32) {
    %c0_i32 = arith.constant 0 : i32
    %c0_i32_0 = arith.constant 0 : i32
    %c0_i32_1 = arith.constant 0 : i32
    return %c0_i32, %c0_i32_0 : i32, i32
  }
  func.func @transform_7(%arg0: i32) -> (i32, i32) {
    %c0_i32 = arith.constant 0 : i32
    %c0_i32_0 = arith.constant 0 : i32
    %c0_i32_1 = arith.constant 0 : i32
    return %c0_i32, %c0_i32_0 : i32, i32
  }
  func.func @transform_8(%arg0: i32) -> (i32, i32) {
    %c0_i32 = arith.constant 0 : i32
    %c0_i32_0 = arith.constant 0 : i32
    %c0_i32_1 = arith.constant 0 : i32
    return %c0_i32, %c0_i32_0 : i32, i32
  }
  func.func @transform_9(%arg0: i32) -> (i32, i32) {
    %c0_i32 = arith.constant 0 : i32
    %c0_i32_0 = arith.constant 0 : i32
    %c0_i32_1 = arith.constant 0 : i32
    return %c0_i32, %c0_i32_0 : i32, i32
  }
  func.func @transform_10(%arg0: i32) -> (i32, i32) {
    %c0_i32 = arith.constant 0 : i32
    %c0_i32_0 = arith.constant 0 : i32
    %c0_i32_1 = arith.constant 0 : i32
    return %c0_i32, %c0_i32_0 : i32, i32
  }
  func.func @transform_11(%arg0: i32) -> (i32, i32, i32) {
    %c0_i32 = arith.constant 0 : i32
    %c0_i32_0 = arith.constant 0 : i32
    %c0_i32_1 = arith.constant 0 : i32
    return %arg0, %c0_i32, %c0_i32_0 : i32, i32, i32
  }
  func.func @transform_12(%arg0: i32) -> (i32, i32, i32) {
    %c0_i32 = arith.constant 0 : i32
    %c0_i32_0 = arith.constant 0 : i32
    %c0_i32_1 = arith.constant 0 : i32
    return %arg0, %c0_i32, %c0_i32_0 : i32, i32, i32
  }
}

</mosaic_0001>

<bundles_post_ra>
// kernel: tpu_custom_call.1
= control target key start
LH: loop header
LB: loop body
LE: loop exit
PB: predicated region body
PF: predicated region fallthrough
CT: control target
= control target key end

     0   :  { %18 = vsyncpa [#allocation4], 0  ;;  %s1771_s0 = inlined_call_operand.hbm [shape: f32[2,8,32], index: 0, kind: input, shape index: {}]   ;;  %s1772_s1 = inlined_call_operand.hbm [shape: f32[2,16,32], index: 1, kind: input, shape index: {}]   ;;  %s1773_s2 = inlined_call_operand.hbm [shape: f32[2,16,32], index: 2, kind: input, shape index: {}]   ;;  %s1774_s3 = inlined_call_operand.hbm [shape: f32[32,32], index: 3, kind: input, shape index: {}]   ;;  %s1775_s4 = inlined_call_operand.hbm [shape: f32[32,32], index: 4, kind: input, shape index: {}]   ;;  %s1776_s5 = inlined_call_operand.hbm [shape: f32[32,32], index: 5, kind: input, shape index: {}]   ;;  %s1777_s6 = inlined_call_operand.hbm [shape: f32[32,32], index: 6, kind: input, shape index: {}]   ;;  %s1778_s7 = inlined_call_operand.vmem [shape: f32[1,32], index: 7, kind: input, shape index: {}]   ;;  %s1779_s8 = inlined_call_operand.vmem [shape: f32[1,32], index: 8, kind: input, shape index: {}]   ;;  %s1780_s9 = inlined_call_operand.vmem [shape: f32[1,32], index: 9, kind: input, shape index: {}]   ;;  %s1781_s10 = inlined_call_operand.vmem [shape: f32[1,32], index: 10, kind: input, shape index: {}]   ;;  %s1782_s11 = inlined_call_operand.hbm [shape: f32[2,8,32], index: 11, kind: output, shape index: {0}]   ;;  %s1783_s12 = inlined_call_operand.hbm [shape: f32[2,8,16], index: 12, kind: output, shape index: {1}]  }
   0x1   :  { %19 = vsyncpa [#allocation7], 0 }
   0x2   :  { %20 = vsyncpa [#allocation10], 0 }
   0x3   :  { %21 = vsyncpa [#allocation13], 0 }
   0x4   :  { %22 = vsyncpa [#allocation5], 0 }
   0x5   :  { %23 = vsyncpa [#allocation17], 0  ;;  %s41_s23 = sshll.u32 %s1772_s1, 4  ;;  %s1459_s24 = smov [#allocation6]   ;;  %s42_s23 = int_to_ptr.hbm [resolvable:$true] %s41_s23 }
   0x6   :  { %s43_s25 = sshll.u32 %s1459_s24, 4  ;;  %s67_s28 = sshll.u32 %s1774_s3, 4  ;;  %s44_s25 = int_to_ptr.vmem [resolvable:$true] %s43_s25  ;;  %s68_s28 = int_to_ptr.hbm [resolvable:$true] %s67_s28 }
   0x7   :  { %s1460_s29 = smov 128   ;;  %s1461_s30 = smov 8  }
   0x8   :  { %49 = dma.hbm_to_vmem [thread:$0]  %s42_s23, 512, %s44_s25, [#allocation7], %s1460_s29, %s1460_s29, %s1461_s30  }
   0x9   :  { %s1462_s13 = smov [#allocation9]   ;;  %s93_s1 = sshll.u32 %s1776_s5, 4  ;;  %s94_s1 = int_to_ptr.hbm [resolvable:$true] %s93_s1 }
   0xa   :  { %s69_s14 = sshll.u32 %s1462_s13, 4  ;;  %s28_s18 = sshll.u32 %s1771_s0, 4  ;;  %s70_s14 = int_to_ptr.vmem [resolvable:$true] %s69_s14  ;;  %s29_s18 = int_to_ptr.hbm [resolvable:$true] %s28_s18 }
   0xb   :  { %75 = dma.hbm_to_vmem [thread:$0]  %s68_s28, 512, %s70_s14, [#allocation10], %s1460_s29, %s1460_s29, %s1461_s30  }
   0xc   :  { %s1463_s19 = smov [#allocation12]   ;;  %s1464_s21 = smov [#allocation3]  }
   0xd   :  { %s95_s20 = sshll.u32 %s1463_s19, 4  ;;  %s30_s5 = sshll.u32 %s1464_s21, 4  ;;  %s96_s20 = int_to_ptr.vmem [resolvable:$true] %s95_s20  ;;  %s31_s5 = int_to_ptr.vmem [resolvable:$true] %s30_s5 }
   0xe   :  { %101 = dma.hbm_to_vmem [thread:$0]  %s94_s1, 512, %s96_s20, [#allocation13], %s1460_s29, %s1460_s29, %s1461_s30  }
   0xf   :  { %s54_s24 = sshll.u32 %s1773_s2, 4  ;;  %s80_s26 = sshll.u32 %s1775_s4, 4  ;;  %s55_s24 = int_to_ptr.hbm [resolvable:$true] %s54_s24  ;;  %s81_s26 = int_to_ptr.hbm [resolvable:$true] %s80_s26 }
  0x10   :  { %36 = dma.hbm_to_vmem [thread:$0]  %s29_s18, 256, %s31_s5, [#allocation4], %s1460_s29, %s1460_s29, %s1461_s30  }
  0x11   :  { %s1465_s27 = smov [#allocation8]   ;;  %s1466_s13 = smov [#allocation11]  }
  0x12   :  { %s56_s28 = sshll.u32 %s1465_s27, 4  ;;  %s82_s2 = sshll.u32 %s1466_s13, 4  ;;  %s57_s28 = int_to_ptr.vmem [resolvable:$true] %s56_s28  ;;  %s83_s2 = int_to_ptr.vmem [resolvable:$true] %s82_s2 }
  0x13   :  { %62 = dma.hbm_to_vmem [thread:$0]  %s55_s24, 512, %s57_s28, [#allocation7], %s1460_s29, %s1460_s29, %s1461_s30  }
  0x14   :  { %s106_s16 = sshll.u32 %s1777_s6, 4  ;;  %s1467_s4 = smov [#allocation14]   ;;  %s107_s16 = int_to_ptr.hbm [resolvable:$true] %s106_s16 }
  0x15   :  { %88 = dma.hbm_to_vmem [thread:$0]  %s81_s26, 512, %s83_s2, [#allocation10], %s1460_s29, %s1460_s29, %s1461_s30  }
  0x16   :  { %s108_s1 = sshll.u32 %s1467_s4, 4  ;;  %s109_s1 = int_to_ptr.vmem [resolvable:$true] %s108_s1 }
  0x17   :  { %114 = dma.hbm_to_vmem [thread:$0]  %s107_s16, 512, %s109_s1, [#allocation13], %s1460_s29, %s1460_s29, %s1461_s30  }
  0x18   :  { %1447 = dma.done.wait [#allocation4], 256  }
  0x19   :  { %1448 = vsyncadd [#allocation4], 4294967040 }
  0x1a   :  { %1449 = dma.done.wait [#allocation7], 1024  }
  0x1b   :  { %1450 = vsyncadd [#allocation7], 4294966272 }
  0x1c   :  { %1451 = dma.done.wait [#allocation10], 1024  }
  0x1d   :  { %1452 = vsyncadd [#allocation10], 4294966272 }
  0x1e   :  { %1453 = dma.done.wait [#allocation13], 1024  }
  0x1f   :  { %1454 = vsyncadd [#allocation13], 4294966272  ;;  %v202_v0 = vld [vmem:[#allocation11 + $0x18] sm:$0xff]  ;;  %v201_v1 = vld [vmem:[#allocation11 + $0x10] sm:$0xff]  ;;  %vm169_vm0 = vcmask 261120   ;;  %s1468_s17 = smov 120  }
  0x20   :  { %231 = vmatpush.msra.mxu1 %v202_v0  ;;  %v164_v2 = vld [vmem:[#allocation9 + $0x18] sm:$0xff]  ;;  %v200_v3 = vld [vmem:[#allocation11 + $0x8] sm:$0xff]  ;;  %v163_v4 = vld [vmem:[#allocation9 + $0x10] sm:$0xff]  ;;  %vm297_vm1 = vcmask 64512   ;;  %vm356_vm2 = vcmask 130048   ;;  %s1472_s5 = smov 24  }
  0x21   :  { %188 = vmatpush.msra.mxu0 %v164_v2  ;;  %v162_v5 = vld [vmem:[#allocation9 + $0x8] sm:$0xff]  ;;  %v199_v6 = vld [vmem:[#allocation11] sm:$0xff]  ;;  %v251_v7 = vld [vmem:[#allocation12 + $0x18] sm:$0xff]  ;;  %s1473_s22 = smov [#allocation16]   ;;  %s1080_s25 = sshll.u32 %s1783_s12, 4  ;;  %s1081_s25 = int_to_ptr.hbm [resolvable:$true] %s1080_s25 }
  0x22   :  { %232 = vmatpush.msra.mxu1 %v201_v1  ;;  %v153_v8 = vld [vmem:[#allocation6] sm:$0xff]  ;;  %280 = vmatpush.msra.mxu2 %v251_v7  ;;  %v250_v10 = vld [vmem:[#allocation12 + $0x10] sm:$0xff]  ;;  %v249_v12 = vld [vmem:[#allocation12 + $0x8] sm:$0xff]  ;;  %s1078_s23 = sshll.u32 %s1473_s22, 4  ;;  %s1474_s28 = smov [#allocation15]   ;;  %s1079_s23 = int_to_ptr.vmem [resolvable:$true] %s1078_s23 }
  0x23   :  { %189 = vmatpush.msra.mxu0 %v163_v4  ;;  %v161_v9 = vld [vmem:[#allocation9] sm:$0xff]  ;;  %v151_v11 = vld [vmem:[#allocation3] sm:$0xff]  ;;  %1145 = vmatpush.msra.mxu3 %v251_v7  ;;  %v160_v15 = vld [vmem:[#allocation8 + $0x18] sm:$0xff]  ;;  %s1065_s13 = sshll.u32 %s1474_s28, 4  ;;  %s1067_s12 = sshll.u32 %s1782_s11, 4  ;;  %s1066_s13 = int_to_ptr.vmem [resolvable:$true] %s1065_s13  ;;  %s1068_s12 = int_to_ptr.hbm [resolvable:$true] %s1067_s12 }
  0x24   :  { %233 = vmatpush.msra.mxu1 %v200_v3  ;;  %281 = vmatpush.msra.mxu2 %v250_v10  ;;  %v248_v13 = vld [vmem:[#allocation12] sm:$0xff]  ;;  %v154_v16 = vld [vmem:[#allocation6 + $0x8] sm:$0xff]  ;;  %v152_v17 = vld [vmem:[#allocation3 + $0x8] sm:$0xff] }
  0x25   :  { %190 = vmatpush.msra.mxu0 %v162_v5  ;;  %v157_v14 = vld [vmem:[#allocation8] sm:$0xff]  ;;  %1146 = vmatpush.msra.mxu3 %v250_v10  ;;  %v158_v18 = vld [vmem:[#allocation8 + $0x8] sm:$0xff]  ;;  %v155_v19 = vld [vmem:[#allocation6 + $0x10] sm:$0xff] }
  0x26   :  { %234 = vmatpush.msra.mxu1 %v199_v6  ;;  %282 = vmatpush.msra.mxu2 %v249_v12  ;;  %v159_v20 = vld [vmem:[#allocation8 + $0x10] sm:$0xff]  ;;  %v156_v21 = vld [vmem:[#allocation6 + $0x18] sm:$0xff]  ;;  %v1195_v22 = vld [vmem:[%s1779_s8] ss:$0 sm:$0xff]  ;;  %s1469_s8 = smov 112  }
  0x27   :  { %1103 = vmatmul.msk.f32.vlgmr.msra.gmra.mxu1 %vm169_vm0, %v153_v8  ;;  %191 = vmatpush.msra.mxu0 %v161_v9  ;;  %v1196_v27 = vld [vmem:[%s1778_s7] ss:$0 sm:$0xff]  ;;  %s1470_s7 = smov 104  }
  0x28   :  { %1101 = vmatmul.msk.f32.vlgmr.msra.gmra.mxu0 %vm169_vm0, %v151_v11  ;;  %283 = vmatpush.msra.mxu2 %v248_v13  ;;  %v1197_v37 = vld [vmem:[%s1780_s9] ss:$0 sm:$0xff]  ;;  %s1471_s9 = smov 16  }
  0x29   :  { %1107 = vmatmul.msk.f32.vlgmr.msra.gmra.mxu2 %vm169_vm0, %v157_v14  ;;  %1147 = vmatpush.msra.mxu3 %v249_v12 }
  0x2b   :  { %1148 = vmatpush.msra.mxu3 %v248_v13 }
  0x2c   :  { %1110 = vmatmul.msk.f32.vlgmr.msra.gmra.mxu3 %vm169_vm0, %v160_v15 }
  0x2f   :  { %1104 = vmatmul.msk.f32.gmra.mxu1 %vm169_vm0, %v154_v16 }
  0x30   :  { %1102 = vmatmul.msk.f32.gmra.mxu0 %vm169_vm0, %v152_v17 }
  0x31   :  { %1108 = vmatmul.msk.f32.gmra.mxu2 %vm169_vm0, %v158_v18 }
  0x37   :  { %1105 = vmatmul.msk.f32.gmra.mxu1 %vm169_vm0, %v155_v19 }
  0x39   :  { %1109 = vmatmul.msk.f32.gmra.mxu2 %vm169_vm0, %v159_v20 }
  0x3f   :  { %1106 = vmatmul.msk.f32.gmra.mxu1 %vm169_vm0, %v156_v21 }
  0xa4   :  { %v236_v23 = vpop.f32.mrf.mxu1 }
  0xa5   :  { %v237_v24 = vadd.f32 %v1195_v22, %v236_v23  ;;  %v193_v28 = vpop.f32.mrf.mxu0 }
  0xa6   :  { %v194_v29 = vadd.f32 %v1196_v27, %v193_v28 }
  0xa7   :  { %459 = vrot.lane.b32.xlu1 %v237_v24, %s1468_s17 }
  0xac   :  { %v239_v25 = vpop.f32.mrf.mxu1  ;;  %v285_v36 = vpop.f32.mrf.mxu2 }
  0xad   :  { %v240_v26 = vadd.f32 %v1195_v22, %v239_v25  ;;  %v196_v33 = vpop.f32.mrf.mxu0  ;;  %v1621_v39 = vadd.f32 %v1197_v37, %v285_v36 }
  0xae   :  { %v197_v35 = vadd.f32 %v1196_v27, %v196_v33 }
  0xaf   :  { %461 = vrot.lane.b32.xlu2 %v240_v26, %s1468_s17  ;;  %1111 = vmatpush.xpose.msk.msrb.mxu3 %vm297_vm1, %v240_v26  ;;  %v294_v41 = vpop.f32.mrf.mxu3 }
  0xb0   :  { %v295_v43 = vadd.f32 %v1197_v37, %v294_v41 }
  0xb3   :  { %1112 = vmatpush.xpose.msk.msrb.mxu3 %vm297_vm1, %v237_v24 }
  0xb4   :  { %v242_v30 = vpop.f32.mrf.mxu1  ;;  %v288_v38 = vpop.f32.mrf.mxu2 }
  0xb5   :  { %v243_v34 = vadd.f32 %v1195_v22, %v242_v30  ;;  %v1623_v40 = vadd.f32 %v1197_v37, %v288_v38 }
  0xb6   :  { %1113 = vmatmul.msk.f32.vlgmr.msrb.gmra.mxu3 %vm297_vm1, %v194_v29 }
  0xb7   :  { %426 = vmatpush.msrb.mxu0 %v1623_v40 }
  0xb9   :  { %427 = vmatpush.msrb.mxu0 %v1621_v39 }
  0xbc   :  { %v245_v31 = vpop.f32.mrf.mxu1  ;;  %v291_v42 = vpop.f32.mrf.mxu2 }
  0xbd   :  { %v1603_v32 = vadd.f32 %v1195_v22, %v245_v31  ;;  %v292_v44 = vadd.f32 %v1197_v37, %v291_v42 }
  0xbf   :  { %493 = vrot.lane.b32.xlu2 %v1603_v32, %s1468_s17  ;;  %682 = vrot.lane.b32.xlu1 %v1603_v32, %s1469_s8  ;;  %v1633_v48 = vpack.i.bf16 %v292_v44, %v295_v43 }
  0xc0   :  { %1114 = vmatpush.xpose.msk.msra.mxu3 %vm297_vm1, %v1603_v32 }
  0xc4   :  { %1115 = vmatpush.xpose.msk.msra.mxu3 %vm297_vm1, %v243_v34 }
  0xc7   :  { %1116 = vmatmul.msk.f32.vlgmr.msra.gmra.mxu3 %vm297_vm1, %v197_v35  ;;  %491 = vrot.lane.b32.xlu2 %v243_v34, %s1468_s17 }
  0xc8   :  { %833 = vrot.lane.b32.xlu1 %v237_v24, %s1470_s7  ;;  %449 = vmatpush.msrb.mxu3 %v295_v43 }
  0xca   :  { %450 = vmatpush.msrb.mxu3 %v292_v44 }
  0xcf   :  { %648 = vrot.lane.b32.xlu2 %v237_v24, %s1469_s8 }
  0xd7   :  { %457 = vrot.lane.b32.xlu2 %v194_v29, %s1468_s17 }
  0xdf   :  { %646 = vrot.lane.b32.xlu2 %v194_v29, %s1469_s8 }
  0xe7   :  { %680 = vrot.lane.b32.xlu2 %v243_v34, %s1469_s8 }
  0xef   :  { %831 = vrot.lane.b32.xlu2 %v194_v29, %s1470_s7 }
  0xf7   :  { %863 = vrot.lane.b32.xlu2 %v197_v35, %s1470_s7 }
 0x109   :  { %v462_v45 = vpop.permute.xlu2 %461 }
 0x10a   :  { %1119 = vmatpush.xpose.msk.msra.mxu0 %vm297_vm1, %v462_v45 }
 0x119   :  { %v494_v46 = vpop.permute.xlu2 %493  ;;  %v460_v47 = vpop.permute.xlu1 %459 }
 0x11a   :  { %1120 = vmatpush.xpose.msk.msra.mxu0 %vm297_vm1, %v460_v47  ;;  %1122 = vmatpush.xpose.msk.msra.mxu3 %vm297_vm1, %v494_v46 }
 0x121   :  { %v492_v49 = vpop.permute.xlu2 %491 }
 0x122   :  { %1123 = vmatpush.xpose.msk.msra.mxu3 %vm297_vm1, %v492_v49 }
 0x129   :  { %v649_v61 = vpop.permute.xlu2 %648 }
 0x131   :  { %v458_v0 = vpop.permute.xlu2 %457  ;;  %v683_v5 = vpop.permute.xlu1 %682 }
 0x139   :  { %v324_v50 = vpop.f32.mrf.mxu3  ;;  %v647_v3 = vpop.permute.xlu2 %646 }
 0x13a   :  { %v357_v51 = vsel %vm356_vm2, %v324_v50, -inf  ;;  %v834_v8 = vpop.permute.xlu1 %833 }
 0x13b   :  { %358 = vmax.xlane.f32.xlu0 %v357_v51 }
 0x141   :  { %v681_v6 = vpop.permute.xlu2 %680 }
 0x149   :  { %v832_v9 = vpop.permute.xlu2 %831 }
 0x14a   :  { %v353_v52 = vpop.f32.mrf.mxu3 }
 0x14b   :  { %v360_v53 = vsel %vm356_vm2, %v353_v52, -inf }
 0x14c   :  { %361 = vmax.xlane.f32.xlu0 %v360_v53 }
 0x151   :  { %v864_v41 = vpop.permute.xlu2 %863 }
 0x160   :  { %650 = vrot.lane.b32.xlu0 %v240_v26, %s1469_s8 }
 0x168   :  { %489 = vrot.lane.b32.xlu0 %v197_v35, %s1468_s17 }
 0x170   :  { %835 = vrot.lane.b32.xlu0 %v240_v26, %s1470_s7 }
 0x178   :  { %678 = vrot.lane.b32.xlu0 %v197_v35, %s1469_s8 }
 0x180   :  { %865 = vrot.lane.b32.xlu0 %v243_v34, %s1470_s7 }
 0x1ae   :  { %v359_v54 = vpop.xlane.xlu0 %358 }
 0x1af   :  { %v363_v55 = vsub.f32 %v324_v50, %v359_v54 }
 0x1b1   :  { %v365_v56 = vmul.f32 1.442695, %v363_v55 }
 0x1b3   :  { %1199 = vpow2.f32 %v365_v56 }
 0x1b9   :  { %v1200_v57 = vpop.eup %1199 }
 0x1ba   :  { %v369_v58 = vsel %vm356_vm2, %v1200_v57, 0.0 }
 0x1bb   :  { %370 = vadd.xlane.f32.xlu1 %v369_v58 }
 0x1bf   :  { %v362_v59 = vpop.xlane.xlu0 %361 }
 0x1c0   :  { %v364_v60 = vsub.f32 %v353_v52, %v362_v59 }
 0x1c2   :  { %v367_v62 = vmul.f32 1.442695, %v364_v60 }
 0x1c4   :  { %1201 = vpow2.f32 %v367_v62 }
 0x1ca   :  { %v1202_v63 = vpop.eup %1201 }
 0x1cb   :  { %v372_v1 = vsel %vm356_vm2, %v1202_v63, 0.0 }
 0x1cc   :  { %373 = vadd.xlane.f32.xlu1 %v372_v1  ;;  %v1165_v1 = vpack.i.bf16 %v1621_v39, %v1623_v40 }
 0x1d2   :  { %v651_v2 = vpop.permute.xlu0 %650 }
 0x1d3   :  { %1127 = vmatpush.xpose.msk.msrb.mxu2 %vm297_vm1, %v651_v2 }
 0x1d7   :  { %1128 = vmatpush.xpose.msk.msrb.mxu2 %vm297_vm1, %v649_v61 }
 0x1da   :  { %1129 = vmatmul.msk.f32.vlgmr.msrb.gmra.mxu2 %vm297_vm1, %v647_v3  ;;  %v490_v4 = vpop.permute.xlu0 %489 }
 0x1e2   :  { %v836_v7 = vpop.permute.xlu0 %835 }
 0x1e3   :  { %1135 = vmatpush.xpose.msk.msra.mxu2 %vm297_vm1, %v836_v7 }
 0x1e5   :  { %867 = vrot.lane.b32.xlu1 %v1603_v32, %s1470_s7 }
 0x1e7   :  { %1136 = vmatpush.xpose.msk.msra.mxu2 %vm297_vm1, %v834_v8 }
 0x1ea   :  { %1137 = vmatmul.msk.f32.vlgmr.msra.gmra.mxu2 %vm297_vm1, %v832_v9  ;;  %v679_v34 = vpop.permute.xlu0 %678 }
 0x1f2   :  { %v866_v38 = vpop.permute.xlu0 %865 }
 0x22e   :  { %v371_v10 = vpop.xlane.xlu1 %370 }
 0x22f   :  { %1203 = vrcp.f32 %v371_v10  ;;  %v386_v14 = vand.u32 2147483648, %v371_v10  ;;  %v384_v16 = vand.u32 2147483647, %v371_v10  ;;  %vm380_vm4 = vweird.f32 %v371_v10 }
 0x231   :  { %v387_v18 = vor.u32 1.1754944e-38, %v386_v14  ;;  %vm385_vm6 = vcmp.eq.f32.partialorder %v384_v16, 8.507059e+37 }
 0x235   :  { %v1204_v11 = vpop.eup %1203 }
 0x236   :  { %v376_v12 = vmul.f32 %v1204_v11, %v371_v10  ;;  %vm381_vm3 = vweird.f32 %v1204_v11 }
 0x237   :  { %vm382_vm5 = vmor %vm380_vm4, %vm381_vm3 }
 0x238   :  { %v377_v13 = vsub.f32 1.0, %v376_v12 }
 0x23a   :  { %v378_v15 = vmul.f32 %v1204_v11, %v377_v13 }
 0x23c   :  { %v379_v17 = vadd.f32 %v1204_v11, %v378_v15 }
 0x23e   :  { %v383_v19 = vsel %vm382_vm5, %v1204_v11, %v379_v17 }
 0x23f   :  { %v374_v20 = vpop.xlane.xlu1 %373  ;;  %v388_v21 = vsel %vm385_vm6, %v387_v18, %v383_v19 }
 0x240   :  { %1205 = vrcp.f32 %v374_v20  ;;  %v1653_v22 = vmul.f32 %v1200_v57, %v388_v21  ;;  %v401_v26 = vand.u32 2147483648, %v374_v20  ;;  %v399_v28 = vand.u32 2147483647, %v374_v20 }
 0x241   :  { %vm395_vm8 = vweird.f32 %v374_v20 }
 0x242   :  { %1117 = vmatmul.msk.f32.vlgmr.msrb.gmra.mxu0 %vm356_vm2, %v1653_v22  ;;  %v402_v30 = vor.u32 1.1754944e-38, %v401_v26  ;;  %vm400_vm10 = vcmp.eq.f32.partialorder %v399_v28, 8.507059e+37 }
 0x246   :  { %v1206_v23 = vpop.eup %1205 }
 0x247   :  { %v391_v24 = vmul.f32 %v1206_v23, %v374_v20  ;;  %vm396_vm7 = vweird.f32 %v1206_v23 }
 0x248   :  { %vm397_vm9 = vmor %vm395_vm8, %vm396_vm7 }
 0x249   :  { %v392_v25 = vsub.f32 1.0, %v391_v24 }
 0x24a   :  { %1121 = vmatmul.msk.f32.vlgmr.msra.gmra.mxu0 %vm297_vm1, %v458_v0 }
 0x24b   :  { %v393_v27 = vmul.f32 %v1206_v23, %v392_v25 }
 0x24d   :  { %v394_v29 = vadd.f32 %v1206_v23, %v393_v27 }
 0x24f   :  { %v398_v31 = vsel %vm397_vm9, %v1206_v23, %v394_v29 }
 0x250   :  { %v403_v32 = vsel %vm400_vm10, %v402_v30, %v398_v31 }
 0x251   :  { %v1658_v33 = vmul.f32 %v1202_v63, %v403_v32 }
 0x253   :  { %1118 = vmatmul.msk.f32.vlgmr.msrb.gmra.mxu3 %vm356_vm2, %v1658_v33 }
 0x254   :  { %1130 = vmatpush.xpose.msk.msrb.mxu3 %vm297_vm1, %v683_v5 }
 0x257   :  { %v868_v35 = vpop.permute.xlu1 %867 }
 0x258   :  { %1131 = vmatpush.xpose.msk.msrb.mxu3 %vm297_vm1, %v681_v6 }
 0x25b   :  { %1124 = vmatmul.msk.f32.vlgmr.msra.gmra.mxu3 %vm297_vm1, %v490_v4 }
 0x25c   :  { %1138 = vmatpush.xpose.msk.msra.mxu3 %vm297_vm1, %v868_v35 }
 0x25d   :  { %v675_v36 = vpop.f32.mrf.mxu2 }
 0x25e   :  { %v710_v37 = vsel %vm356_vm2, %v675_v36, -inf }
 0x25f   :  { %711 = vmax.xlane.f32.xlu2 %v710_v37 }
 0x260   :  { %1139 = vmatpush.xpose.msk.msra.mxu3 %vm297_vm1, %v866_v38 }
 0x263   :  { %1132 = vmatmul.msk.f32.vlgmr.msrb.gmra.mxu3 %vm297_vm1, %v679_v34 }
 0x26b   :  { %1140 = vmatmul.msk.f32.vlgmr.msra.gmra.mxu3 %vm297_vm1, %v864_v41 }
 0x26d   :  { %v860_v42 = vpop.f32.mrf.mxu2 }
 0x26e   :  { %v895_v43 = vsel %vm356_vm2, %v860_v42, -inf }
 0x26f   :  { %896 = vmax.xlane.f32.xlu0 %v895_v43 }
 0x2bf   :  { %v429_v44 = vpop.f32.mrf.mxu0 }
 0x2c0   :  { %455 = vst.msk [vmem:[#allocation2] sm:$0xff] %vm297_vm1, %v429_v44 }
 0x2c7   :  { %v486_v45 = vpop.f32.mrf.mxu0 }
 0x2c8   :  { %v521_v46 = vsel %vm356_vm2, %v486_v45, -inf }
 0x2c9   :  { %522 = vmax.xlane.f32.xlu1 %v521_v46 }
 0x2d2   :  { %v712_v52 = vpop.xlane.xlu2 %711 }
 0x2d3   :  { %v716_v55 = vsub.f32 %v675_v36, %v712_v52 }
 0x2d5   :  { %v718_v58 = vmul.f32 1.442695, %v716_v55 }
 0x2d6   :  { %v452_v47 = vpop.f32.mrf.mxu3 }
 0x2d7   :  { %456 = vst.msk [vmem:[#allocation2 + $0x8] sm:$0xff] %vm297_vm1, %v452_v47 }
 0x2de   :  { %v518_v49 = vpop.f32.mrf.mxu3 }
 0x2df   :  { %v524_v50 = vsel %vm356_vm2, %v518_v49, -inf }
 0x2e0   :  { %525 = vmax.xlane.f32.xlu0 %v524_v50 }
 0x2e2   :  { %v897_v51 = vpop.xlane.xlu0 %896 }
 0x2e3   :  { %v901_v53 = vsub.f32 %v860_v42, %v897_v51 }
 0x2e5   :  { %v903_v54 = vmul.f32 1.442695, %v901_v53 }
 0x2e6   :  { %v707_v56 = vpop.f32.mrf.mxu3 }
 0x2e7   :  { %1207 = vpow2.f32 %v903_v54  ;;  %v713_v57 = vsel %vm356_vm2, %v707_v56, -inf }
 0x2e8   :  { %714 = vmax.xlane.f32.xlu1 %v713_v57  ;;  %1209 = vpow2.f32 %v718_v58 }
 0x2ed   :  { %v1676_v59 = vpop.eup %1207 }
 0x2ee   :  { %v892_v60 = vpop.f32.mrf.mxu3  ;;  %v907_v61 = vsel %vm356_vm2, %v1676_v59, 0.0  ;;  %v1681_v63 = vpop.eup %1209 }
 0x2ef   :  { %908 = vadd.xlane.f32.xlu0 %v907_v61  ;;  %v898_v62 = vsel %vm356_vm2, %v892_v60, -inf  ;;  %v722_v0 = vsel %vm356_vm2, %v1681_v63, 0.0 }
 0x2f0   :  { %899 = vmax.xlane.f32.xlu2 %v898_v62 }
 0x2f8   :  { %723 = vadd.xlane.f32.xlu2 %v722_v0 }
 0x303   :  { %1171 = vrot.lane.b32.xlu0 %v1633_v48, %s1468_s17 }
 0x310   :  { %1166 = vrot.lane.b32.xlu2 %v1165_v1, %s1468_s17 }
 0x318   :  { %1181 = vrot.lane.b32.xlu2 %v1633_v48, %s1469_s8 }
 0x320   :  { %1191 = vrot.lane.b32.xlu2 %v1633_v48, %s1470_s7 }
 0x33c   :  { %v523_v2 = vpop.xlane.xlu1 %522 }
 0x33d   :  { %v527_v3 = vsub.f32 %v486_v45, %v523_v2 }
 0x33f   :  { %v529_v4 = vmul.f32 1.442695, %v527_v3 }
 0x341   :  { %1211 = vpow2.f32 %v529_v4 }
 0x347   :  { %v1694_v5 = vpop.eup %1211 }
 0x348   :  { %v533_v6 = vsel %vm356_vm2, %v1694_v5, 0.0 }
 0x349   :  { %534 = vadd.xlane.f32.xlu1 %v533_v6 }
 0x353   :  { %v526_v7 = vpop.xlane.xlu0 %525 }
 0x354   :  { %v528_v39 = vsub.f32 %v518_v49, %v526_v7 }
 0x356   :  { %v531_v40 = vmul.f32 1.442695, %v528_v39 }
 0x358   :  { %1213 = vpow2.f32 %v531_v40 }
 0x35b   :  { %v715_v8 = vpop.xlane.xlu1 %714 }
 0x35c   :  { %v717_v9 = vsub.f32 %v707_v56, %v715_v8 }
 0x35e   :  { %v1698_v10 = vpop.eup %1213  ;;  %v720_v11 = vmul.f32 1.442695, %v717_v9 }
 0x35f   :  { %v536_v48 = vsel %vm356_vm2, %v1698_v10, 0.0 }
 0x360   :  { %1215 = vpow2.f32 %v720_v11  ;;  %537 = vadd.xlane.f32.xlu0 %v536_v48 }
 0x362   :  { %v1706_v18 = vpop.xlane.xlu0 %908 }
 0x363   :  { %v900_v12 = vpop.xlane.xlu2 %899  ;;  %vm918_vm15 = vweird.f32 %v1706_v18  ;;  %v924_v54 = vand.u32 2147483648, %v1706_v18  ;;  %v922_v56 = vand.u32 2147483647, %v1706_v18 }
 0x364   :  { %v902_v13 = vsub.f32 %v892_v60, %v900_v12 }
 0x365   :  { %vm923_vm8 = vcmp.eq.f32.partialorder %v922_v56, 8.507059e+37 }
 0x366   :  { %v1702_v14 = vpop.eup %1215  ;;  %v905_v15 = vmul.f32 1.442695, %v902_v13 }
 0x367   :  { %v725_v16 = vsel %vm356_vm2, %v1702_v14, 0.0 }
 0x368   :  { %1217 = vpow2.f32 %v905_v15  ;;  %726 = vadd.xlane.f32.xlu1 %v725_v16 }
 0x36b   :  { %v724_v17 = vpop.xlane.xlu2 %723 }
 0x36c   :  { %1219 = vrcp.f32 %v724_v17  ;;  %vm733_vm13 = vweird.f32 %v724_v17  ;;  %v737_v47 = vand.u32 2147483647, %v724_v17  ;;  %v739_v49 = vand.u32 2147483648, %v724_v17 }
 0x36d   :  { %1221 = vrcp.f32 %v1706_v18 }
 0x36e   :  { %v1708_v19 = vpop.eup %1217  ;;  %v740_v60 = vor.u32 1.1754944e-38, %v739_v49  ;;  %vm738_vm6 = vcmp.eq.f32.partialorder %v737_v47, 8.507059e+37 }
 0x36f   :  { %v910_v20 = vsel %vm356_vm2, %v1708_v19, 0.0 }
 0x370   :  { %911 = vadd.xlane.f32.xlu1 %v910_v20 }
 0x372   :  { %v1220_v31 = vpop.eup %1219 }
 0x373   :  { %v1167_v21 = vpop.permute.xlu2 %1166  ;;  %v1222_v32 = vpop.eup %1221  ;;  %v729_v34 = vmul.f32 %v1220_v31, %v724_v17  ;;  %vm734_vm12 = vweird.f32 %v1220_v31 }
 0x374   :  { %v1168_v23 = vunpack.i.l.bf16 %v1167_v21  ;;  %1186 = vrot.lane.b32.xlu0 %v1165_v1, %s1470_s7  ;;  %v1169_v25 = vunpack.i.h.bf16 %v1167_v21  ;;  %v914_v35 = vmul.f32 %v1222_v32, %v1706_v18  ;;  %vm919_vm11 = vweird.f32 %v1222_v32  ;;  %vm735_vm1 = vmor %vm733_vm13, %vm734_vm12 }
 0x375   :  { %v1172_v24 = vpop.permute.xlu0 %1171  ;;  %v730_v37 = vsub.f32 1.0, %v729_v34  ;;  %vm1719_vm3 = vmor %vm918_vm15, %vm919_vm11 }
 0x376   :  { %598 = vmatpush.msrb.mxu0 %v1168_v23  ;;  %v1173_v26 = vunpack.i.l.bf16 %v1172_v24  ;;  %v1174_v27 = vunpack.i.h.bf16 %v1172_v24  ;;  %v915_v38 = vsub.f32 1.0, %v914_v35 }
 0x377   :  { %v731_v41 = vmul.f32 %v1220_v31, %v730_v37 }
 0x378   :  { %599 = vmatpush.msrb.mxu0 %v1169_v25  ;;  %629 = vmatpush.msrb.mxu1 %v1173_v26  ;;  %v916_v43 = vmul.f32 %v1222_v32, %v915_v38 }
 0x379   :  { %v732_v45 = vadd.f32 %v1220_v31, %v731_v41 }
 0x37a   :  { %630 = vmatpush.msrb.mxu1 %v1174_v27  ;;  %v917_v51 = vadd.f32 %v1222_v32, %v916_v43 }
 0x37b   :  { %v1182_v28 = vpop.permute.xlu2 %1181  ;;  %v736_v57 = vsel %vm735_vm1, %v1220_v31, %v732_v45 }
 0x37c   :  { %v1183_v29 = vunpack.i.l.bf16 %v1182_v28  ;;  %v1184_v30 = vunpack.i.h.bf16 %v1182_v28  ;;  %v921_v62 = vsel %vm1719_vm3, %v1222_v32, %v917_v51  ;;  %v741_v2 = vsel %vm738_vm6, %v740_v60, %v736_v57 }
 0x37d   :  { %v1730_v39 = vmul.f32 %v1681_v63, %v741_v2 }
 0x37e   :  { %814 = vmatpush.msra.mxu1 %v1183_v29 }
 0x380   :  { %815 = vmatpush.msra.mxu1 %v1184_v30 }
 0x383   :  { %v1192_v24 = vpop.permute.xlu2 %1191 }
 0x384   :  { %v1193_v29 = vunpack.i.l.bf16 %v1192_v24  ;;  %v1194_v32 = vunpack.i.h.bf16 %v1192_v24 }
 0x389   :  { %1176 = vrot.lane.b32.xlu1 %v1165_v1, %s1469_s8  ;;  %v925_v1 = vor.u32 1.1754944e-38, %v924_v54 }
 0x38b   :  { %v926_v6 = vsel %vm923_vm8, %v925_v1, %v921_v62  ;;  %vm1013_vm8 = vcmask 261312  }
 0x38c   :  { %v1733_v8 = vmul.f32 %v1676_v59, %v926_v6  ;;  %v1020_v6 = vld [vmem:[#allocation14 + $0x10] sm:$0xff] }
 0x3bc   :  { %v535_v36 = vpop.xlane.xlu1 %534 }
 0x3bd   :  { %1223 = vrcp.f32 %v535_v36  ;;  %v550_v50 = vand.u32 2147483648, %v535_v36  ;;  %v548_v53 = vand.u32 2147483647, %v535_v36  ;;  %vm544_vm4 = vweird.f32 %v535_v36 }
 0x3bf   :  { %v551_v61 = vor.u32 1.1754944e-38, %v550_v50  ;;  %vm549_vm7 = vcmp.eq.f32.partialorder %v548_v53, 8.507059e+37 }
 0x3c3   :  { %v1224_v42 = vpop.eup %1223 }
 0x3c4   :  { %v540_v44 = vmul.f32 %v1224_v42, %v535_v36  ;;  %vm545_vm14 = vweird.f32 %v1224_v42 }
 0x3c5   :  { %vm546_vm5 = vmor %vm544_vm4, %vm545_vm14 }
 0x3c6   :  { %v541_v46 = vsub.f32 1.0, %v540_v44 }
 0x3c8   :  { %v542_v52 = vmul.f32 %v1224_v42, %v541_v46 }
 0x3ca   :  { %v543_v58 = vadd.f32 %v1224_v42, %v542_v52 }
 0x3cc   :  { %v547_v0 = vsel %vm546_vm5, %v1224_v42, %v543_v58 }
 0x3cd   :  { %v552_v3 = vsel %vm549_vm7, %v551_v61, %v547_v0  ;;  %vm643_vm7 = vcmask 130112  }
 0x3ce   :  { %v569_v4 = vmul.f32 %v1694_v5, %v552_v3 }
 0x3d0   :  { %v571_v7 = vadd.f32 %v569_v4, %v1653_v22  ;;  %1125 = vmatmul.msk.f32.vlgmr.msrb.gmra.mxu0 %vm356_vm2, %v569_v4  ;;  %v1021_v4 = vld [vmem:[#allocation14 + $0x18] sm:$0xff] }
 0x3d1   :  { %1044 = vmatpush.msrb.mxu2 %v1021_v4 }
 0x3d2   :  { %v760_v9 = vadd.f32 %v1730_v39, %v571_v7  ;;  %v1019_v7 = vld [vmem:[#allocation14 + $0x8] sm:$0xff] }
 0x3d3   :  { %v538_v40 = vpop.xlane.xlu0 %537  ;;  %1045 = vmatpush.msrb.mxu2 %v1020_v6 }
 0x3d4   :  { %1225 = vrcp.f32 %v538_v40  ;;  %v945_v11 = vadd.f32 %v1733_v8, %v760_v9  ;;  %v565_v63 = vand.u32 2147483648, %v538_v40  ;;  %v563_v16 = vand.u32 2147483647, %v538_v40 }
 0x3d5   :  { %vm559_vm10 = vweird.f32 %v538_v40  ;;  %1046 = vmatpush.msrb.mxu2 %v1019_v7 }
 0x3d6   :  { %v1057_v48 = vmul.f32 0.25, %v945_v11  ;;  %v566_v18 = vor.u32 1.1754944e-38, %v565_v63  ;;  %vm564_vm12 = vcmp.eq.f32.partialorder %v563_v16, 8.507059e+37 }
 0x3d8   :  { %1059 = vst.msk [vmem:[#allocation16] sm:$0xff] %vm356_vm2, %v1057_v48 }
 0x3da   :  { %v1226_v5 = vpop.eup %1225 }
 0x3db   :  { %v555_v12 = vmul.f32 %v1226_v5, %v538_v40  ;;  %v727_v22 = vpop.xlane.xlu1 %726  ;;  %vm560_vm9 = vweird.f32 %v1226_v5  ;;  %v1018_v40 = vld [vmem:[#allocation14] sm:$0xff] }
 0x3dc   :  { %1227 = vrcp.f32 %v727_v22  ;;  %vm561_vm11 = vmor %vm559_vm10, %vm560_vm9  ;;  %v754_v27 = vand.u32 2147483648, %v727_v22  ;;  %v752_v31 = vand.u32 2147483647, %v727_v22  ;;  %vm748_vm14 = vweird.f32 %v727_v22  ;;  %1047 = vmatpush.msrb.mxu2 %v1018_v40 }
 0x3dd   :  { %v556_v13 = vsub.f32 1.0, %v555_v12 }
 0x3de   :  { %v755_v36 = vor.u32 1.1754944e-38, %v754_v27  ;;  %vm753_vm1 = vcmp.eq.f32.partialorder %v752_v31, 8.507059e+37 }
 0x3df   :  { %v557_v15 = vmul.f32 %v1226_v5, %v556_v13 }
 0x3e1   :  { %v558_v17 = vadd.f32 %v1226_v5, %v557_v15 }
 0x3e2   :  { %v1228_v59 = vpop.eup %1227 }
 0x3e3   :  { %v744_v20 = vmul.f32 %v1228_v59, %v727_v22  ;;  %v912_v21 = vpop.xlane.xlu1 %911  ;;  %v562_v23 = vsel %vm561_vm11, %v1226_v5, %v558_v17  ;;  %vm749_vm13 = vweird.f32 %v1228_v59  ;;  %v1198_v22 = vld [vmem:[%s1781_s10] ss:$0 sm:$0xff] }
 0x3e4   :  { %1229 = vrcp.f32 %v912_v21  ;;  %v567_v26 = vsel %vm564_vm12, %v566_v18, %v562_v23  ;;  %vm750_vm15 = vmor %vm748_vm14, %vm749_vm13  ;;  %v939_v43 = vand.u32 2147483648, %v912_v21  ;;  %v937_v45 = vand.u32 2147483647, %v912_v21 }
 0x3e5   :  { %v745_v25 = vsub.f32 1.0, %v744_v20  ;;  %v570_v28 = vmul.f32 %v1698_v10, %v567_v26  ;;  %vm933_vm4 = vweird.f32 %v912_v21 }
 0x3e6   :  { %v940_v47 = vor.u32 1.1754944e-38, %v939_v43  ;;  %vm938_vm6 = vcmp.eq.f32.partialorder %v937_v45, 8.507059e+37  ;;  %v1187_v57 = vpop.permute.xlu0 %1186 }
 0x3e7   :  { %v746_v30 = vmul.f32 %v1228_v59, %v745_v25  ;;  %1126 = vmatmul.msk.f32.vlgmr.msrb.gmra.mxu1 %vm356_vm2, %v570_v28  ;;  %v572_v50 = vadd.f32 %v570_v28, %v1658_v33  ;;  %v1188_v60 = vunpack.i.l.bf16 %v1187_v57  ;;  %v1189_v33 = vunpack.i.h.bf16 %v1187_v57 }
 0x3e8   :  { %999 = vmatpush.msrb.mxu1 %v1193_v29 }
 0x3e9   :  { %v747_v34 = vadd.f32 %v1228_v59, %v746_v30 }
 0x3ea   :  { %v1230_v35 = vpop.eup %1229  ;;  %1000 = vmatpush.msrb.mxu1 %v1194_v32 }
 0x3eb   :  { %v751_v37 = vsel %vm750_vm15, %v1228_v59, %v747_v34  ;;  %v929_v38 = vmul.f32 %v1230_v35, %v912_v21  ;;  %vm934_vm3 = vweird.f32 %v1230_v35 }
 0x3ec   :  { %v756_v41 = vsel %vm753_vm1, %v755_v36, %v751_v37  ;;  %vm935_vm5 = vmor %vm933_vm4, %vm934_vm3 }
 0x3ed   :  { %v759_v10 = vmul.f32 %v1702_v14, %v756_v41  ;;  %v930_v42 = vsub.f32 1.0, %v929_v38 }
 0x3ef   :  { %v931_v44 = vmul.f32 %v1230_v35, %v930_v42  ;;  %1134 = vmatmul.msk.f32.vlgmr.msra.gmra.mxu1 %vm356_vm2, %v759_v10  ;;  %v761_v52 = vadd.f32 %v759_v10, %v572_v50 }
 0x3f1   :  { %v932_v46 = vadd.f32 %v1230_v35, %v931_v44 }
 0x3f3   :  { %v936_v49 = vsel %vm935_vm5, %v1230_v35, %v932_v46 }
 0x3f4   :  { %v941_v51 = vsel %vm938_vm6, %v940_v47, %v936_v49 }
 0x3f5   :  { %v944_v53 = vmul.f32 %v1708_v19, %v941_v51 }
 0x3f7   :  { %v946_v14 = vadd.f32 %v944_v53, %v761_v52  ;;  %1142 = vmatmul.msk.f32.vlgmr.msrb.gmra.mxu1 %vm356_vm2, %v944_v53 }
 0x3f9   :  { %v1058_v54 = vmul.f32 0.25, %v946_v14 }
 0x3fb   :  { %v1177_v55 = vpop.permute.xlu1 %1176  ;;  %1060 = vst.msk [vmem:[#allocation16 + $0x8] sm:$0xff] %vm356_vm2, %v1058_v54 }
 0x3fc   :  { %v1178_v56 = vunpack.i.l.bf16 %v1177_v55  ;;  %v1179_v58 = vunpack.i.h.bf16 %v1177_v55  ;;  %1086 = dma.vmem_to_hbm [thread:$0]  %s1079_s23, 256, %s1081_s25, [#allocation17], %s1460_s29, %s1460_s29, %s1461_s30  }
 0x3fe   :  { %785 = vmatpush.msra.mxu0 %v1178_v56 }
 0x400   :  { %786 = vmatpush.msra.mxu0 %v1179_v58 }
 0x401   :  { %1133 = vmatmul.msk.f32.vlgmr.msra.gmra.mxu0 %vm356_vm2, %v1730_v39 }
 0x402   :  { %970 = vmatpush.msrb.mxu0 %v1188_v60 }
 0x404   :  { %971 = vmatpush.msrb.mxu0 %v1189_v33 }
 0x409   :  { %1141 = vmatmul.msk.f32.vlgmr.msrb.gmra.mxu0 %vm356_vm2, %v1733_v8  ;;  %vm828_vm2 = vcmask 195712  }
 0x44d   :  { %v601_v19 = vpop.f32.mrf.mxu0 }
 0x44e   :  { %637 = vrot.lane.b32.xlu0 %v601_v19, %s1461_s30 }
 0x464   :  { %v632_v61 = vpop.f32.mrf.mxu1 }
 0x465   :  { %639 = vrot.lane.b32.xlu0 %v632_v61, %s1461_s30 }
 0x46c   :  { %v817_v0 = vpop.f32.mrf.mxu1 }
 0x474   :  { %v1002_v2 = vpop.f32.mrf.mxu1 }
 0x47e   :  { %v788_v62 = vpop.f32.mrf.mxu0 }
 0x47f   :  { %822 = vrot.lane.b32.xlu1 %v788_v62, %s1471_s9 }
 0x486   :  { %v973_v1 = vpop.f32.mrf.mxu0 }
 0x487   :  { %1007 = vrot.lane.b32.xlu2 %v973_v1, %s1472_s5  ;;  %824 = vrot.lane.b32.xlu1 %v817_v0, %s1471_s9 }
 0x48f   :  { %1009 = vrot.lane.b32.xlu2 %v1002_v2, %s1472_s5 }
 0x4c0   :  { %v638_v3 = vpop.permute.xlu0 %637 }
 0x4c1   :  { %644 = vst.msk [vmem:[#allocation2] sm:$0xff] %vm643_vm7, %v638_v3 }
 0x4d7   :  { %v640_v39 = vpop.permute.xlu0 %639 }
 0x4d8   :  { %645 = vst.msk [vmem:[#allocation2 + $0x8] sm:$0xff] %vm643_vm7, %v640_v39 }
 0x4e1   :  { %v1008_v8 = vpop.permute.xlu2 %1007 }
 0x4e9   :  { %v1010_v48 = vpop.permute.xlu2 %1009 }
 0x4f1   :  { %v823_v9 = vpop.permute.xlu1 %822 }
 0x4f2   :  { %829 = vst.msk [vmem:[#allocation2] sm:$0xff] %vm828_vm2, %v823_v9 }
 0x4f3   :  { %1014 = vst.msk [vmem:[#allocation2] sm:$0xff] %vm1013_vm8, %v1008_v8 }
 0x4f9   :  { %v825_v11 = vpop.permute.xlu1 %824 }
 0x4fa   :  { %830 = vst.msk [vmem:[#allocation2 + $0x8] sm:$0xff] %vm828_vm2, %v825_v11  ;;  %v1016_v5 = vld [vmem:[#allocation2] sm:$0xff] }
 0x4fb   :  { %1015 = vst.msk [vmem:[#allocation2 + $0x8] sm:$0xff] %vm1013_vm8, %v1010_v48  ;;  %1143 = vmatmul.msk.f32.vlgmr.msrb.gmra.mxu2 %vm169_vm0, %v1016_v5 }
 0x502   :  { %v1017_v12 = vld [vmem:[#allocation2 + $0x8] sm:$0xff] }
 0x503   :  { %1144 = vmatmul.msk.f32.gmra.mxu2 %vm169_vm0, %v1017_v12 }
 0x57e   :  { %v1049_v13 = vpop.f32.mrf.mxu2 }
 0x57f   :  { %v1050_v15 = vadd.f32 %v1198_v22, %v1049_v13 }
 0x581   :  { %1055 = vst.msk [vmem:[#allocation15] sm:$0xff] %vm169_vm0, %v1050_v15 }
 0x586   :  { %v1052_v63 = vpop.f32.mrf.mxu2 }
 0x587   :  { %v1053_v16 = vadd.f32 %v1198_v22, %v1052_v63 }
 0x589   :  { %1056 = vst.msk [vmem:[#allocation15 + $0x8] sm:$0xff] %vm169_vm0, %v1053_v16 }
 0x58a   :  { %1073 = dma.vmem_to_hbm [thread:$0]  %s1066_s13, 256, %s1068_s12, [#allocation5], %s1460_s29, %s1460_s29, %s1461_s30  }
 0x58b   :  { %1455 = dma.done.wait [#allocation5], 256  }
 0x58c   :  { %1456 = vsyncadd [#allocation5], 4294967040 }
 0x58d   :  { %1457 = dma.done.wait [#allocation17], 256  }
 0x58e   :  { %1458 = vsyncadd [#allocation17], 4294967040 }
 0x58f   :  { %1095 = vsyncpa [#allocation4], 1 }
 0x590   :  { %1096 = vsyncpa [#allocation7], 1 }
 0x591   :  { %1097 = vsyncpa [#allocation10], 1 }
 0x592   :  { %1098 = vsyncpa [#allocation13], 1 }
 0x593   :  { %1099 = vsyncpa [#allocation5], 1 }
 0x594   :  { %1100 = vsyncpa [#allocation17], 1 }

</bundles_post_ra>
